<compile_context>
chip_gen: v5e
topology: v5e:2x2
jax: 0.10.0
libtpu: 0.0.40
codegen_flags: <defaults>
</compile_context>

<pallas_src>
import math

import jax
import jax.numpy as jnp
from jax import lax
from jax.experimental import pallas as pl
from jax.experimental.pallas import tpu as pltpu


def make_vitmae_attention_kernel(seq_len, hidden, num_heads, compute_dtype):
    head_dim = hidden // num_heads

    def kernel(x_ref, wq_ref, wk_ref, wv_ref, wo_ref,
               qb_ref, vb_ref, ob_ref, o_ref, acc_ref):
        # x_ref block: (1, S, H) compute_dtype; weights: (H, H) compute_dtype;
        # biases: (1, H) fp32; acc_ref: (S, H) fp32 VMEM scratch.
        x = x_ref[0]                                             # (S, H)

        # Projections with fp32 accumulation. 1/sqrt(d_head) is already folded
        # into wq_ref / qb_ref on the host, so no extra scale pass here.
        q = (jnp.dot(x, wq_ref[...], preferred_element_type=jnp.float32)
             + qb_ref[...]).astype(compute_dtype)
        # key bias is explicitly zero in the HF ViTMAE forward (k_bias = zeros).
        k = jnp.dot(x, wk_ref[...],
                    preferred_element_type=jnp.float32).astype(compute_dtype)
        v = (jnp.dot(x, wv_ref[...], preferred_element_type=jnp.float32)
             + vb_ref[...]).astype(compute_dtype)

        # Static head loop; each head's partial result is accumulated into the
        # fp32 scratch immediately (bounded live ranges, no lane-axis concat).
        for h in range(num_heads):
            lo = h * head_dim
            qh = q[:, lo:lo + head_dim]                          # (S, dh)
            kh = k[:, lo:lo + head_dim]
            vh = v[:, lo:lo + head_dim]

            # q @ k^T without materializing a transpose: contract last dims.
            scores = lax.dot_general(qh, kh, (((1,), (1,)), ((), ())),
                                     preferred_element_type=jnp.float32)
            scores = scores - jnp.max(scores, axis=-1, keepdims=True)
            p = jnp.exp(scores)
            p = p * pl.reciprocal(jnp.sum(p, axis=-1, keepdims=True), approx=True)

            ctx_h = jnp.dot(p.astype(compute_dtype), vh,
                            preferred_element_type=jnp.float32)  # (S, dh)

            # Fold this head straight into the output projection: sublane row
            # slice of Wo (already (H_in, H_out)), accumulate in fp32.
            partial = jnp.dot(ctx_h.astype(compute_dtype),
                              wo_ref[lo:lo + head_dim, :],
                              preferred_element_type=jnp.float32)
            if h == 0:
                # Initialize accumulator with the output bias + first head:
                # saves a zero-init pass and the final bias-add pass.
                acc_ref[...] = ob_ref[...] + partial
            else:
                acc_ref[...] += partial

        o_ref[0] = acc_ref[...].astype(o_ref.dtype)

    return kernel


def vitmae_attention(hidden_states, wq, wk, wv, wo, q_bias, v_bias, o_bias,
                     num_heads, *, compute_dtype=jnp.bfloat16):
    """hidden_states: (B, S, H). wq/wk/wv/wo: (H_out, H_in) PyTorch layout."""
    B, S, H = hidden_states.shape
    out_dtype = hidden_states.dtype
    head_dim = H // num_heads
    scale = 1.0 / math.sqrt(head_dim)

    # Pre-transpose to (H_in, H_out) so the kernel does x @ W; fold the 1/sqrt(dh)
    # attention scale into Wq / q_bias; cast matmul operands to the compute dtype
    # (bf16 by default), keep biases fp32.
    x_c = hidden_states.astype(compute_dtype)
    wq_t = (wq.astype(jnp.float32) * scale).T.astype(compute_dtype)
    wk_t = wk.T.astype(compute_dtype)
    wv_t = wv.T.astype(compute_dtype)
    wo_t = wo.T.astype(compute_dtype)
    qb = (q_bias.astype(jnp.float32) * scale).reshape(1, H)
    vb = v_bias.reshape(1, H).astype(jnp.float32)
    ob = o_bias.reshape(1, H).astype(jnp.float32)

    kernel = make_vitmae_attention_kernel(S, H, num_heads, compute_dtype)

    wspec = pl.BlockSpec((H, H), lambda b: (0, 0))   # grid-invariant weights
    bspec = pl.BlockSpec((1, H), lambda b: (0, 0))

    # Rough VMEM budget: weights + activations (double-buffered by the auto
    # pipeliner) + fp32 scratch + q/k/v/scores transients, with 2x headroom.
    cb = jnp.dtype(compute_dtype).itemsize
    ob_b = jnp.dtype(out_dtype).itemsize
    est = (4 * H * H * cb * 2            # wq/wk/wv/wo (double-buffered)
           + S * H * cb * 2              # x block
           + S * H * ob_b * 2            # out block
           + S * H * 4                   # fp32 accumulator scratch
           + (3 * S * H + 2 * S * S) * 4)  # q/k/v + scores/probs transients
    # Cap at 48 MiB (v7x has only 64 MiB physical VMEM per TC), floor at 32 MiB.
    vmem_limit = int(min(48 * 1024 * 1024, max(32 * 1024 * 1024, 2 * est)))

    return pl.pallas_call(
        kernel,
        out_shape=jax.ShapeDtypeStruct((B, S, H), out_dtype),
        grid_spec=pltpu.PrefetchScalarGridSpec(
            num_scalar_prefetch=0,
            grid=(B,),
            in_specs=[
                pl.BlockSpec((1, S, H), lambda b: (b, 0, 0)),  # hidden_states
                wspec, wspec, wspec, wspec,                    # wq, wk, wv, wo (T)
                bspec, bspec, bspec,                           # q_bias, v_bias, o_bias
            ],
            out_specs=pl.BlockSpec((1, S, H), lambda b: (b, 0, 0)),
            scratch_shapes=[pltpu.VMEM((S, H), jnp.float32)],
        ),
        compiler_params=pltpu.CompilerParams(
            dimension_semantics=("parallel",),   # batch axis feeds both TCs (B>=2)
            vmem_limit_bytes=vmem_limit),
    )(x_c, wq_t, wk_t, wv_t, wo_t, qb, vb, ob)


def vitmae_attention_ref(x, wq, wk, wv, wo, q_bias, v_bias, o_bias, num_heads):
    """Pure-JAX fp32 reference mirroring the PyTorch forward."""
    B, S, H = x.shape
    dh = H // num_heads
    q = x @ wq.T + q_bias
    k = x @ wk.T            # key bias is zeros
    v = x @ wv.T + v_bias

    def split(t):  # (B,S,H) -> (B,nh,S,dh)
        return t.reshape(B, S, num_heads, dh).transpose(0, 2, 1, 3)

    qh, kh, vh = split(q), split(k), split(v)
    scores = jnp.einsum("bhqd,bhkd->bhqk", qh, kh) / math.sqrt(dh)
    probs = jax.nn.softmax(scores, axis=-1)
    ctx = jnp.einsum("bhqk,bhkd->bhqd", probs, vh)
    ctx = ctx.transpose(0, 2, 1, 3).reshape(B, S, H)
    return ctx @ wo.T + o_bias


if __name__ == "__main__":
    B, S, H = 2, 8, 32
    NUM_HEADS = 4

    key = jax.random.PRNGKey(0)
    keys = jax.random.split(key, 8)
    x = jax.random.normal(keys[0], (B, S, H), dtype=jnp.float32)
    wq = jax.random.normal(keys[1], (H, H), dtype=jnp.float32) * 0.05
    wk = jax.random.normal(keys[2], (H, H), dtype=jnp.float32) * 0.05
    wv = jax.random.normal(keys[3], (H, H), dtype=jnp.float32) * 0.05
    wo = jax.random.normal(keys[4], (H, H), dtype=jnp.float32) * 0.05
    q_bias = jax.random.normal(keys[5], (H,), dtype=jnp.float32) * 0.02
    v_bias = jax.random.normal(keys[6], (H,), dtype=jnp.float32) * 0.02
    o_bias = jax.random.normal(keys[7], (H,), dtype=jnp.float32) * 0.02

    ref = vitmae_attention_ref(x, wq, wk, wv, wo, q_bias, v_bias, o_bias, NUM_HEADS)

    # fp32 compute path (tight tolerance; approx reciprocal only deviation).
    out_f32 = vitmae_attention(x, wq, wk, wv, wo, q_bias, v_bias, o_bias,
                               NUM_HEADS, compute_dtype=jnp.float32)
    out_f32 = jax.block_until_ready(out_f32)
    assert out_f32.shape == (B, S, H)
    assert jnp.allclose(out_f32, ref, atol=5e-3, rtol=5e-3), "fp32 path mismatch"

    # bf16 compute path (MXU-friendly default; relaxed tolerance).
    out_bf16 = vitmae_attention(x, wq, wk, wv, wo, q_bias, v_bias, o_bias,
                                NUM_HEADS, compute_dtype=jnp.bfloat16)
    out_bf16 = jax.block_until_ready(out_bf16)
    assert out_bf16.shape == (B, S, H)
    assert jnp.allclose(out_bf16, ref, atol=2e-2, rtol=2e-2), "bf16 path mismatch"

    print("KERNEL_OK")
</pallas_src>

<mosaic_0001>
module attributes {stable_mosaic.version = 11 : i64} {
  func.func @kernel(%arg0: i32, %arg1: memref<1x8x32xf32, #tpu.memory_space<vmem>>, %arg2: memref<32x32xf32, #tpu.memory_space<vmem>>, %arg3: memref<32x32xf32, #tpu.memory_space<vmem>>, %arg4: memref<32x32xf32, #tpu.memory_space<vmem>>, %arg5: memref<32x32xf32, #tpu.memory_space<vmem>>, %arg6: memref<1x32xf32, #tpu.memory_space<vmem>>, %arg7: memref<1x32xf32, #tpu.memory_space<vmem>>, %arg8: memref<1x32xf32, #tpu.memory_space<vmem>>, %arg9: memref<1x8x32xf32, #tpu.memory_space<vmem>>, %arg10: memref<8x32xf32, #tpu.memory_space<vmem>>) attributes {dimension_semantics = [#tpu.dimension_semantics<parallel>], iteration_bounds = array<i64: 2>, scalar_prefetch = 0 : i64, scratch_operands = 1 : i64, tpu.core_type = #tpu.core_type<tc>, window_params = [{transform_indices = @transform_0, window_bounds = array<i64: 1, 8, 32>}, {pipeline_mode = #tpu.pipeline_mode<synchronous>, transform_indices = @transform_1, window_bounds = array<i64: 32, 32>}, {pipeline_mode = #tpu.pipeline_mode<synchronous>, transform_indices = @transform_2, window_bounds = array<i64: 32, 32>}, {pipeline_mode = #tpu.pipeline_mode<synchronous>, transform_indices = @transform_3, window_bounds = array<i64: 32, 32>}, {pipeline_mode = #tpu.pipeline_mode<synchronous>, transform_indices = @transform_4, window_bounds = array<i64: 32, 32>}, {pipeline_mode = #tpu.pipeline_mode<synchronous>, transform_indices = @transform_5, window_bounds = array<i64: 1, 32>}, {pipeline_mode = #tpu.pipeline_mode<synchronous>, transform_indices = @transform_6, window_bounds = array<i64: 1, 32>}, {pipeline_mode = #tpu.pipeline_mode<synchronous>, transform_indices = @transform_7, window_bounds = array<i64: 1, 32>}, {transform_indices = @transform_8, window_bounds = array<i64: 1, 8, 32>}]} {
    %c0 = arith.constant 0 : index
    %c0_0 = arith.constant 0 : index
    %c0_1 = arith.constant 0 : index
    %0 = vector.load %arg1[%c0, %c0_0, %c0_1] : memref<1x8x32xf32, #tpu.memory_space<vmem>>, vector<1x8x32xf32>
    %1 = vector.shape_cast %0 : vector<1x8x32xf32> to vector<8x32xf32>
    %c0_2 = arith.constant 0 : index
    %c0_3 = arith.constant 0 : index
    %2 = vector.load %arg2[%c0_2, %c0_3] : memref<32x32xf32, #tpu.memory_space<vmem>>, vector<32x32xf32>
    %cst = arith.constant dense<0.000000e+00> : vector<8x32xf32>
    %3 = tpu.matmul %1, %2, %cst {dimension_numbers = #tpu.dot_dimension_numbers<[1], [0], [0], [1], [0, 0, 1, 1], [], []>} : vector<8x32xf32>, vector<32x32xf32>, vector<8x32xf32> -> vector<8x32xf32>
    %c0_4 = arith.constant 0 : index
    %c0_5 = arith.constant 0 : index
    %4 = vector.load %arg6[%c0_4, %c0_5] : memref<1x32xf32, #tpu.memory_space<vmem>>, vector<1x32xf32>
    %5 = vector.broadcast %4 : vector<1x32xf32> to vector<8x32xf32>
    %6 = arith.addf %3, %5 : vector<8x32xf32>
    %c0_6 = arith.constant 0 : index
    %c0_7 = arith.constant 0 : index
    %7 = vector.load %arg3[%c0_6, %c0_7] : memref<32x32xf32, #tpu.memory_space<vmem>>, vector<32x32xf32>
    %cst_8 = arith.constant dense<0.000000e+00> : vector<8x32xf32>
    %8 = tpu.matmul %1, %7, %cst_8 {dimension_numbers = #tpu.dot_dimension_numbers<[1], [0], [0], [1], [0, 0, 1, 1], [], []>} : vector<8x32xf32>, vector<32x32xf32>, vector<8x32xf32> -> vector<8x32xf32>
    %c0_9 = arith.constant 0 : index
    %c0_10 = arith.constant 0 : index
    %9 = vector.load %arg4[%c0_9, %c0_10] : memref<32x32xf32, #tpu.memory_space<vmem>>, vector<32x32xf32>
    %cst_11 = arith.constant dense<0.000000e+00> : vector<8x32xf32>
    %10 = tpu.matmul %1, %9, %cst_11 {dimension_numbers = #tpu.dot_dimension_numbers<[1], [0], [0], [1], [0, 0, 1, 1], [], []>} : vector<8x32xf32>, vector<32x32xf32>, vector<8x32xf32> -> vector<8x32xf32>
    %c0_12 = arith.constant 0 : index
    %c0_13 = arith.constant 0 : index
    %11 = vector.load %arg7[%c0_12, %c0_13] : memref<1x32xf32, #tpu.memory_space<vmem>>, vector<1x32xf32>
    %12 = vector.broadcast %11 : vector<1x32xf32> to vector<8x32xf32>
    %13 = arith.addf %10, %12 : vector<8x32xf32>
    %14 = vector.extract_strided_slice %6 {offsets = [0, 0], sizes = [8, 8], strides = [1, 1]} : vector<8x32xf32> to vector<8x8xf32>
    %15 = vector.extract_strided_slice %8 {offsets = [0, 0], sizes = [8, 8], strides = [1, 1]} : vector<8x32xf32> to vector<8x8xf32>
    %16 = vector.extract_strided_slice %13 {offsets = [0, 0], sizes = [8, 8], strides = [1, 1]} : vector<8x32xf32> to vector<8x8xf32>
    %cst_14 = arith.constant dense<0.000000e+00> : vector<8x8xf32>
    %17 = tpu.matmul %14, %15, %cst_14 {dimension_numbers = #tpu.dot_dimension_numbers<[1], [1], [0], [0], [0, 0, 1, 0], [], []>} : vector<8x8xf32>, vector<8x8xf32>, vector<8x8xf32> -> vector<8x8xf32>
    %cst_15 = arith.constant dense<0xFF800000> : vector<8xf32>
    %18 = vector.multi_reduction <maximumf>, %17, %cst_15 [1] : vector<8x8xf32> to vector<8xf32>
    %19 = vector.shape_cast %18 : vector<8xf32> to vector<8x1xf32>
    %20 = vector.broadcast %19 : vector<8x1xf32> to vector<8x8xf32>
    %21 = arith.subf %17, %20 : vector<8x8xf32>
    %22 = math.exp %21 : vector<8x8xf32>
    %cst_16 = arith.constant dense<0.000000e+00> : vector<8xf32>
    %23 = vector.multi_reduction <add>, %22, %cst_16 [1] : vector<8x8xf32> to vector<8xf32>
    %24 = vector.shape_cast %23 : vector<8xf32> to vector<8x1xf32>
    %25 = tpu.reciprocal %24 {approx = true} : vector<8x1xf32> -> vector<8x1xf32>
    %26 = vector.broadcast %25 : vector<8x1xf32> to vector<8x8xf32>
    %27 = arith.mulf %22, %26 : vector<8x8xf32>
    %cst_17 = arith.constant dense<0.000000e+00> : vector<8x8xf32>
    %28 = tpu.matmul %27, %16, %cst_17 {dimension_numbers = #tpu.dot_dimension_numbers<[1], [0], [0], [1], [0, 0, 1, 1], [], []>} : vector<8x8xf32>, vector<8x8xf32>, vector<8x8xf32> -> vector<8x8xf32>
    %c0_18 = arith.constant 0 : index
    %c0_19 = arith.constant 0 : index
    %29 = vector.load %arg5[%c0_18, %c0_19] : memref<32x32xf32, #tpu.memory_space<vmem>>, vector<8x32xf32>
    %cst_20 = arith.constant dense<0.000000e+00> : vector<8x32xf32>
    %30 = tpu.matmul %28, %29, %cst_20 {dimension_numbers = #tpu.dot_dimension_numbers<[1], [0], [0], [1], [0, 0, 1, 1], [], []>} : vector<8x8xf32>, vector<8x32xf32>, vector<8x32xf32> -> vector<8x32xf32>
    %c0_21 = arith.constant 0 : index
    %c0_22 = arith.constant 0 : index
    %31 = vector.load %arg8[%c0_21, %c0_22] : memref<1x32xf32, #tpu.memory_space<vmem>>, vector<1x32xf32>
    %32 = vector.broadcast %31 : vector<1x32xf32> to vector<8x32xf32>
    %33 = arith.addf %32, %30 : vector<8x32xf32>
    %c0_23 = arith.constant 0 : index
    %c0_24 = arith.constant 0 : index
    %34 = vector.load %arg10[%c0_23, %c0_24] : memref<8x32xf32, #tpu.memory_space<vmem>>, vector<8x32xf32>
    tpu.vector_store %arg10[%c0_23, %c0_24], %33 {strides = array<i32>} : memref<8x32xf32, #tpu.memory_space<vmem>>, vector<8x32xf32>,
    %35 = vector.extract_strided_slice %6 {offsets = [0, 8], sizes = [8, 8], strides = [1, 1]} : vector<8x32xf32> to vector<8x8xf32>
    %36 = vector.extract_strided_slice %8 {offsets = [0, 8], sizes = [8, 8], strides = [1, 1]} : vector<8x32xf32> to vector<8x8xf32>
    %37 = vector.extract_strided_slice %13 {offsets = [0, 8], sizes = [8, 8], strides = [1, 1]} : vector<8x32xf32> to vector<8x8xf32>
    %cst_25 = arith.constant dense<0.000000e+00> : vector<8x8xf32>
    %38 = tpu.matmul %35, %36, %cst_25 {dimension_numbers = #tpu.dot_dimension_numbers<[1], [1], [0], [0], [0, 0, 1, 0], [], []>} : vector<8x8xf32>, vector<8x8xf32>, vector<8x8xf32> -> vector<8x8xf32>
    %cst_26 = arith.constant dense<0xFF800000> : vector<8xf32>
    %39 = vector.multi_reduction <maximumf>, %38, %cst_26 [1] : vector<8x8xf32> to vector<8xf32>
    %40 = vector.shape_cast %39 : vector<8xf32> to vector<8x1xf32>
    %41 = vector.broadcast %40 : vector<8x1xf32> to vector<8x8xf32>
    %42 = arith.subf %38, %41 : vector<8x8xf32>
    %43 = math.exp %42 : vector<8x8xf32>
    %cst_27 = arith.constant dense<0.000000e+00> : vector<8xf32>
    %44 = vector.multi_reduction <add>, %43, %cst_27 [1] : vector<8x8xf32> to vector<8xf32>
    %45 = vector.shape_cast %44 : vector<8xf32> to vector<8x1xf32>
    %46 = tpu.reciprocal %45 {approx = true} : vector<8x1xf32> -> vector<8x1xf32>
    %47 = vector.broadcast %46 : vector<8x1xf32> to vector<8x8xf32>
    %48 = arith.mulf %43, %47 : vector<8x8xf32>
    %cst_28 = arith.constant dense<0.000000e+00> : vector<8x8xf32>
    %49 = tpu.matmul %48, %37, %cst_28 {dimension_numbers = #tpu.dot_dimension_numbers<[1], [0], [0], [1], [0, 0, 1, 1], [], []>} : vector<8x8xf32>, vector<8x8xf32>, vector<8x8xf32> -> vector<8x8xf32>
    %c8 = arith.constant 8 : index
    %c0_29 = arith.constant 0 : index
    %50 = vector.load %arg5[%c8, %c0_29] : memref<32x32xf32, #tpu.memory_space<vmem>>, vector<8x32xf32>
    %cst_30 = arith.constant dense<0.000000e+00> : vector<8x32xf32>
    %51 = tpu.matmul %49, %50, %cst_30 {dimension_numbers = #tpu.dot_dimension_numbers<[1], [0], [0], [1], [0, 0, 1, 1], [], []>} : vector<8x8xf32>, vector<8x32xf32>, vector<8x32xf32> -> vector<8x32xf32>
    %c0_31 = arith.constant 0 : index
    %c0_32 = arith.constant 0 : index
    %52 = vector.load %arg10[%c0_31, %c0_32] : memref<8x32xf32, #tpu.memory_space<vmem>>, vector<8x32xf32>
    %53 = arith.addf %52, %51 : vector<8x32xf32>
    %c0_33 = arith.constant 0 : index
    %c0_34 = arith.constant 0 : index
    %54 = vector.load %arg10[%c0_33, %c0_34] : memref<8x32xf32, #tpu.memory_space<vmem>>, vector<8x32xf32>
    tpu.vector_store %arg10[%c0_33, %c0_34], %53 {strides = array<i32>} : memref<8x32xf32, #tpu.memory_space<vmem>>, vector<8x32xf32>,
    %55 = vector.extract_strided_slice %6 {offsets = [0, 16], sizes = [8, 8], strides = [1, 1]} : vector<8x32xf32> to vector<8x8xf32>
    %56 = vector.extract_strided_slice %8 {offsets = [0, 16], sizes = [8, 8], strides = [1, 1]} : vector<8x32xf32> to vector<8x8xf32>
    %57 = vector.extract_strided_slice %13 {offsets = [0, 16], sizes = [8, 8], strides = [1, 1]} : vector<8x32xf32> to vector<8x8xf32>
    %cst_35 = arith.constant dense<0.000000e+00> : vector<8x8xf32>
    %58 = tpu.matmul %55, %56, %cst_35 {dimension_numbers = #tpu.dot_dimension_numbers<[1], [1], [0], [0], [0, 0, 1, 0], [], []>} : vector<8x8xf32>, vector<8x8xf32>, vector<8x8xf32> -> vector<8x8xf32>
    %cst_36 = arith.constant dense<0xFF800000> : vector<8xf32>
    %59 = vector.multi_reduction <maximumf>, %58, %cst_36 [1] : vector<8x8xf32> to vector<8xf32>
    %60 = vector.shape_cast %59 : vector<8xf32> to vector<8x1xf32>
    %61 = vector.broadcast %60 : vector<8x1xf32> to vector<8x8xf32>
    %62 = arith.subf %58, %61 : vector<8x8xf32>
    %63 = math.exp %62 : vector<8x8xf32>
    %cst_37 = arith.constant dense<0.000000e+00> : vector<8xf32>
    %64 = vector.multi_reduction <add>, %63, %cst_37 [1] : vector<8x8xf32> to vector<8xf32>
    %65 = vector.shape_cast %64 : vector<8xf32> to vector<8x1xf32>
    %66 = tpu.reciprocal %65 {approx = true} : vector<8x1xf32> -> vector<8x1xf32>
    %67 = vector.broadcast %66 : vector<8x1xf32> to vector<8x8xf32>
    %68 = arith.mulf %63, %67 : vector<8x8xf32>
    %cst_38 = arith.constant dense<0.000000e+00> : vector<8x8xf32>
    %69 = tpu.matmul %68, %57, %cst_38 {dimension_numbers = #tpu.dot_dimension_numbers<[1], [0], [0], [1], [0, 0, 1, 1], [], []>} : vector<8x8xf32>, vector<8x8xf32>, vector<8x8xf32> -> vector<8x8xf32>
    %c16 = arith.constant 16 : index
    %c0_39 = arith.constant 0 : index
    %70 = vector.load %arg5[%c16, %c0_39] : memref<32x32xf32, #tpu.memory_space<vmem>>, vector<8x32xf32>
    %cst_40 = arith.constant dense<0.000000e+00> : vector<8x32xf32>
    %71 = tpu.matmul %69, %70, %cst_40 {dimension_numbers = #tpu.dot_dimension_numbers<[1], [0], [0], [1], [0, 0, 1, 1], [], []>} : vector<8x8xf32>, vector<8x32xf32>, vector<8x32xf32> -> vector<8x32xf32>
    %c0_41 = arith.constant 0 : index
    %c0_42 = arith.constant 0 : index
    %72 = vector.load %arg10[%c0_41, %c0_42] : memref<8x32xf32, #tpu.memory_space<vmem>>, vector<8x32xf32>
    %73 = arith.addf %72, %71 : vector<8x32xf32>
    %c0_43 = arith.constant 0 : index
    %c0_44 = arith.constant 0 : index
    %74 = vector.load %arg10[%c0_43, %c0_44] : memref<8x32xf32, #tpu.memory_space<vmem>>, vector<8x32xf32>
    tpu.vector_store %arg10[%c0_43, %c0_44], %73 {strides = array<i32>} : memref<8x32xf32, #tpu.memory_space<vmem>>, vector<8x32xf32>,
    %75 = vector.extract_strided_slice %6 {offsets = [0, 24], sizes = [8, 8], strides = [1, 1]} : vector<8x32xf32> to vector<8x8xf32>
    %76 = vector.extract_strided_slice %8 {offsets = [0, 24], sizes = [8, 8], strides = [1, 1]} : vector<8x32xf32> to vector<8x8xf32>
    %77 = vector.extract_strided_slice %13 {offsets = [0, 24], sizes = [8, 8], strides = [1, 1]} : vector<8x32xf32> to vector<8x8xf32>
    %cst_45 = arith.constant dense<0.000000e+00> : vector<8x8xf32>
    %78 = tpu.matmul %75, %76, %cst_45 {dimension_numbers = #tpu.dot_dimension_numbers<[1], [1], [0], [0], [0, 0, 1, 0], [], []>} : vector<8x8xf32>, vector<8x8xf32>, vector<8x8xf32> -> vector<8x8xf32>
    %cst_46 = arith.constant dense<0xFF800000> : vector<8xf32>
    %79 = vector.multi_reduction <maximumf>, %78, %cst_46 [1] : vector<8x8xf32> to vector<8xf32>
    %80 = vector.shape_cast %79 : vector<8xf32> to vector<8x1xf32>
    %81 = vector.broadcast %80 : vector<8x1xf32> to vector<8x8xf32>
    %82 = arith.subf %78, %81 : vector<8x8xf32>
    %83 = math.exp %82 : vector<8x8xf32>
    %cst_47 = arith.constant dense<0.000000e+00> : vector<8xf32>
    %84 = vector.multi_reduction <add>, %83, %cst_47 [1] : vector<8x8xf32> to vector<8xf32>
    %85 = vector.shape_cast %84 : vector<8xf32> to vector<8x1xf32>
    %86 = tpu.reciprocal %85 {approx = true} : vector<8x1xf32> -> vector<8x1xf32>
    %87 = vector.broadcast %86 : vector<8x1xf32> to vector<8x8xf32>
    %88 = arith.mulf %83, %87 : vector<8x8xf32>
    %cst_48 = arith.constant dense<0.000000e+00> : vector<8x8xf32>
    %89 = tpu.matmul %88, %77, %cst_48 {dimension_numbers = #tpu.dot_dimension_numbers<[1], [0], [0], [1], [0, 0, 1, 1], [], []>} : vector<8x8xf32>, vector<8x8xf32>, vector<8x8xf32> -> vector<8x8xf32>
    %c24 = arith.constant 24 : index
    %c0_49 = arith.constant 0 : index
    %90 = vector.load %arg5[%c24, %c0_49] : memref<32x32xf32, #tpu.memory_space<vmem>>, vector<8x32xf32>
    %cst_50 = arith.constant dense<0.000000e+00> : vector<8x32xf32>
    %91 = tpu.matmul %89, %90, %cst_50 {dimension_numbers = #tpu.dot_dimension_numbers<[1], [0], [0], [1], [0, 0, 1, 1], [], []>} : vector<8x8xf32>, vector<8x32xf32>, vector<8x32xf32> -> vector<8x32xf32>
    %c0_51 = arith.constant 0 : index
    %c0_52 = arith.constant 0 : index
    %92 = vector.load %arg10[%c0_51, %c0_52] : memref<8x32xf32, #tpu.memory_space<vmem>>, vector<8x32xf32>
    %93 = arith.addf %92, %91 : vector<8x32xf32>
    %c0_53 = arith.constant 0 : index
    %c0_54 = arith.constant 0 : index
    %94 = vector.load %arg10[%c0_53, %c0_54] : memref<8x32xf32, #tpu.memory_space<vmem>>, vector<8x32xf32>
    tpu.vector_store %arg10[%c0_53, %c0_54], %93 {strides = array<i32>} : memref<8x32xf32, #tpu.memory_space<vmem>>, vector<8x32xf32>,
    %c0_55 = arith.constant 0 : index
    %c0_56 = arith.constant 0 : index
    %95 = vector.load %arg10[%c0_55, %c0_56] : memref<8x32xf32, #tpu.memory_space<vmem>>, vector<8x32xf32>
    %c0_57 = arith.constant 0 : index
    %c0_58 = arith.constant 0 : index
    %c0_59 = arith.constant 0 : index
    %96 = vector.load %arg9[%c0_57, %c0_58, %c0_59] : memref<1x8x32xf32, #tpu.memory_space<vmem>>, vector<1x8x32xf32>
    %97 = vector.shape_cast %96 : vector<1x8x32xf32> to vector<8x32xf32>
    %98 = vector.shape_cast %95 : vector<8x32xf32> to vector<1x8x32xf32>
    tpu.vector_store %arg9[%c0_57, %c0_58, %c0_59], %98 {strides = array<i32>} : memref<1x8x32xf32, #tpu.memory_space<vmem>>, vector<1x8x32xf32>,
    return
  }
  func.func @transform_0(%arg0: i32) -> (i32, i32, i32) {
    %c0_i32 = arith.constant 0 : i32
    %c0_i32_0 = arith.constant 0 : i32
    %c0_i32_1 = arith.constant 0 : i32
    return %arg0, %c0_i32, %c0_i32_0 : i32, i32, i32
  }
  func.func @transform_1(%arg0: i32) -> (i32, i32) {
    %c0_i32 = arith.constant 0 : i32
    %c0_i32_0 = arith.constant 0 : i32
    %c0_i32_1 = arith.constant 0 : i32
    return %c0_i32, %c0_i32_0 : i32, i32
  }
  func.func @transform_2(%arg0: i32) -> (i32, i32) {
    %c0_i32 = arith.constant 0 : i32
    %c0_i32_0 = arith.constant 0 : i32
    %c0_i32_1 = arith.constant 0 : i32
    return %c0_i32, %c0_i32_0 : i32, i32
  }
  func.func @transform_3(%arg0: i32) -> (i32, i32) {
    %c0_i32 = arith.constant 0 : i32
    %c0_i32_0 = arith.constant 0 : i32
    %c0_i32_1 = arith.constant 0 : i32
    return %c0_i32, %c0_i32_0 : i32, i32
  }
  func.func @transform_4(%arg0: i32) -> (i32, i32) {
    %c0_i32 = arith.constant 0 : i32
    %c0_i32_0 = arith.constant 0 : i32
    %c0_i32_1 = arith.constant 0 : i32
    return %c0_i32, %c0_i32_0 : i32, i32
  }
  func.func @transform_5(%arg0: i32) -> (i32, i32) {
    %c0_i32 = arith.constant 0 : i32
    %c0_i32_0 = arith.constant 0 : i32
    %c0_i32_1 = arith.constant 0 : i32
    return %c0_i32, %c0_i32_0 : i32, i32
  }
  func.func @transform_6(%arg0: i32) -> (i32, i32) {
    %c0_i32 = arith.constant 0 : i32
    %c0_i32_0 = arith.constant 0 : i32
    %c0_i32_1 = arith.constant 0 : i32
    return %c0_i32, %c0_i32_0 : i32, i32
  }
  func.func @transform_7(%arg0: i32) -> (i32, i32) {
    %c0_i32 = arith.constant 0 : i32
    %c0_i32_0 = arith.constant 0 : i32
    %c0_i32_1 = arith.constant 0 : i32
    return %c0_i32, %c0_i32_0 : i32, i32
  }
  func.func @transform_8(%arg0: i32) -> (i32, i32, i32) {
    %c0_i32 = arith.constant 0 : i32
    %c0_i32_0 = arith.constant 0 : i32
    %c0_i32_1 = arith.constant 0 : i32
    return %arg0, %c0_i32, %c0_i32_0 : i32, i32, i32
  }
}

</mosaic_0001>

<bundles_post_ra>
// kernel: tpu_custom_call.1
= control target key start
LH: loop header
LB: loop body
LE: loop exit
PB: predicated region body
PF: predicated region fallthrough
CT: control target
= control target key end

     0   :  { %s1622_s0 = inlined_call_operand.hbm [shape: f32[2,8,32], index: 0, kind: input, shape index: {}]   ;;  %s1623_s1 = inlined_call_operand.hbm [shape: f32[32,32], index: 1, kind: input, shape index: {}]   ;;  %s1624_s2 = inlined_call_operand.hbm [shape: f32[32,32], index: 2, kind: input, shape index: {}]   ;;  %s1625_s3 = inlined_call_operand.hbm [shape: f32[32,32], index: 3, kind: input, shape index: {}]   ;;  %s1626_s4 = inlined_call_operand.hbm [shape: f32[32,32], index: 4, kind: input, shape index: {}]   ;;  %s1627_s5 = inlined_call_operand.vmem [shape: f32[1,32], index: 5, kind: input, shape index: {}]   ;;  %s1628_s6 = inlined_call_operand.vmem [shape: f32[1,32], index: 6, kind: input, shape index: {}]   ;;  %s1629_s7 = inlined_call_operand.vmem [shape: f32[1,32], index: 7, kind: input, shape index: {}]   ;;  %s1630_s8 = inlined_call_operand.hbm [shape: f32[2,8,32], index: 8, kind: output, shape index: {}]  }
   0x1   :  { %1631 = sst [smem:[#allocation17_spill]] %s1623_s1 }
   0x2   :  { %1632 = sst [smem:[#allocation18_spill]] %s1624_s2 }
   0x3   :  { %1633 = sst [smem:[#allocation19_spill]] %s1625_s3 }
   0x4   :  { %13 = vsyncpa [#allocation4], 0 }
   0x5   :  { %15 = vsyncpa [#allocation4 + $0x1], 0 }
   0x6   :  { %16 = vsyncpa [#allocation7], 0 }
   0x7   :  { %17 = vsyncpa [#allocation10], 0 }
   0x8   :  { %18 = vsyncpa [#allocation5], 0 }
   0x9   :  { %20 = vsyncpa [#allocation5 + $0x1], 0  ;;  %s1398_s27 = smov 0   ;;  %s1400_s28 = smov 0  }
   0xa   :  { %s1402_s29 = smov 0   ;;  %s1404_s30 = smov 0  }
   0xb LB: > { %s1634_s1 = sld [smem:[#allocation17_spill]]  ;;  %s1422_s12 = sadd.s32 4294967295, %s1342_s30   ;;  %s1342_s30 = sphi %s1404_s30, %s1648_s30   ;;  %s1338_s29 = sphi %s1402_s29, %s1647_s29   ;;  %s1334_s28 = sphi %s1400_s28, %s1646_s28   ;;  %s1330_s27 = sphi %s1398_s27, %s1645_s27  }
   0xc   : > { %p969_p0 = scmp.ge.s32.totalorder %s1342_s30, 1  ;;  %p47_p1 = scmp.eq.s32.totalorder %s1422_s12, 0 }
   0xd   : > { %p230_p2 = scmp.lt.s32.totalorder %s1342_s30, 3  ;;  %s1344_s14 = smov [#allocation6]  }
   0xe   : > { %s243_s15 = sshll.u32 %s1344_s14, 4  ;;  %s1636_s3 = sld [smem:[#allocation19_spill]]  ;;  %s244_s15 = int_to_ptr.vmem [resolvable:$true] %s243_s15 }
   0xf   : > { %p1427_p3 = pnand %p969_p0, %p230_p2  ;;  %s1638_s2 = sld [smem:[#allocation18_spill]] }
  0x10   : > { %s1345_s23 = smov [#allocation9]   ;;  %s1346_s25 = smov 128  }
  0x11   : > { %s241_s11 = sshll.u32 %s1634_s1, 4  ;;  %p1027_p4 = pneg %p1427_p3  ;;  %s242_s11 = int_to_ptr.hbm [resolvable:$true] %s241_s11 }
  0x12   : > { %s271_s24 = sshll.u32 %s1345_s23, 4  ;;  %s1347_s26 = smov 8   ;;  %s272_s24 = int_to_ptr.vmem [resolvable:$true] %s271_s24 }
  0x13   : > { %p1439_p6 = pnand %p1027_p4, %p47_p1  ;;  %s283_s14 = sshll.u32 %s1626_s4, 4  ;;  %s284_s14 = int_to_ptr.hbm [resolvable:$true] %s283_s14 }
  0x14   : > { %s269_s18 = sshll.u32 %s1636_s3, 4  ;;  %s1348_s16 = smov [#allocation8]   ;;  %s270_s18 = int_to_ptr.hbm [resolvable:$true] %s269_s18 }
  0x15   : > { %s255_s22 = sshll.u32 %s1638_s2, 4  ;;  %s257_s17 = sshll.u32 %s1348_s16, 4  ;;  %s256_s22 = int_to_ptr.hbm [resolvable:$true] %s255_s22  ;;  %s258_s17 = int_to_ptr.vmem [resolvable:$true] %s257_s17 }
  0x16   : > { %1030 = dma.hbm_to_vmem [thread:$0]  (!%p1439_p6), %s242_s11, 512, %s244_s15, [#allocation7], %s1346_s25, %s1346_s25, %s1347_s26  }
  0x17   : > { %1036 = dma.hbm_to_vmem [thread:$0]  (!%p1439_p6), %s270_s18, 512, %s272_s24, [#allocation10], %s1346_s25, %s1346_s25, %s1347_s26  }
  0x18   : > { %1033 = dma.hbm_to_vmem [thread:$0]  (!%p1439_p6), %s256_s22, 512, %s258_s17, [#allocation7], %s1346_s25, %s1346_s25, %s1347_s26  }
  0x19   : > { %s1349_s11 = smov [#allocation11]   ;;  %s968_s18 = sadd.s32 4294967294, %s1342_s30  }
  0x1a   : > { %s285_s15 = sshll.u32 %s1349_s11, 4  ;;  %s1459_s20 = sadd.s32 1, %s1342_s30   ;;  %s286_s15 = int_to_ptr.vmem [resolvable:$true] %s285_s15 }
  0x1b   : > { %1039 = dma.hbm_to_vmem [thread:$0]  (!%p1439_p6), %s284_s14, 512, %s286_s15, [#allocation10], %s1346_s25, %s1346_s25, %s1347_s26  }
  0x1c   : > { %s30_s21 = ssub.s32 %s1342_s30, %s1459_s20  ;;  %s33_s23 = sadd.s32 1, %s1338_s29 }
  0x1d   : > { %p31_p7 = scmp.eq.s32.totalorder %s30_s21, 0  ;;  %p40_p8 = scmp.ne.s32.totalorder %s1338_s29, %s1334_s28 }
  0x1e   : > { %p41_p9 = scmp.eq.s32.totalorder %s1342_s30, 0  ;;  %p46_p10 = scmp.ne.s32.totalorder %s1334_s28, %s1330_s27 }
  0x1f   : > { %s1470_s22 = scalar_select %p31_p7, %s1338_s29, %s33_s23  }
  0x20   : > { %p1472_p11 = por %p41_p9, %p40_p8  ;;  %p1478_p12 = por %p47_p1, %p46_p10 }
  0x21   : > { %p217_p13 = scmp.eq.s32.totalorder %s1422_s12, 1  ;;  %p223_p0 = scmp.eq.s32.totalorder %s968_s18, 1 }
  0x22   : > { %p1052_p2 = scmp.lt.s32.totalorder %s1342_s30, 2  ;;  %s308_s25 = sand.u32 1, %s1338_s29  }
  0x23   : > { %p1485_p4 = por %p217_p13, %p40_p8  ;;  %p1489_p6 = por %p223_p0, %p46_p10 }
  0x24   : > { %s975_s10 = sshll.u32 %s308_s25, 3  ;;  %s976_s14 = sshll.u32 %s1342_s30, 3 }
  0x25   : > { %s316_s11 = scalar_lea.hbm %s1622_s0, %s976_s14  ;;  %s312_s15 = scalar_lea.vmem [#allocation3], %s975_s10 }
  0x26   : > { %s320_s21 = sshll.u32 %s312_s15, 4  ;;  %s318_s23 = sshll.u32 %s316_s11, 4  ;;  %s321_s21 = int_to_ptr.vmem [resolvable:$true] %s320_s21  ;;  %s319_s23 = int_to_ptr.hbm [resolvable:$true] %s318_s23 }
  0x27   : > { %p1499_p7 = pnand %p1052_p2, %p1472_p11  ;;  %s309_s1 = scalar_lea.sflag [#allocation4], %s308_s25 }
  0x28   : > { %s1238_s2 = sshra.s32 %s319_s23, 4  ;;  %s1245_s16 = scalar_lea.hbm %s1622_s0, 16  ;;  %s1239_s2 = int_to_ptr.hbm [resolvable:$true] %s1238_s2 }
  0x29   : > { %s1240_s3 = scalar_lea.hbm %s1239_s2, 8  ;;  %p1242_p9 = pneg %p1499_p7 }
  0x2a   : > { %p1241_p8 = scmp.ne.s32.totalorder %s1239_s2, %s1240_s3  ;;  %p1246_p11 = scmp.lt.s32.totalorder %s1239_s2, %s1622_s0 }
  0x2b   : > { %p1247_p0 = scmp.lt.s32.totalorder %s1245_s16, %s1240_s3 }
  0x2c   : > { %p1243_p10 = pnand %p1242_p9, %p1241_p8 }
  0x2d   : > { %p1248_p2 = por %p1247_p0, %p1246_p11 }
  0x2e   : > { %p1244_p13 = pneg %p1243_p10 }
  0x30   : > { %p1249_p5 = pnand %p1248_p2, %p1244_p13 }
  0x32   : > { %1252 = shalt.err (!%p1249_p5)
}
  0x33   : > { %1043 = dma.hbm_to_vmem [thread:$0]  (!%p1499_p7), %s319_s23, 128, %s321_s21, %s309_s1  }
  0x34   : > { %329 = sbr.rel (%p1427_p3) target bundleno = 1490 (0x5d2), region = 52  ;;  %s1516_s25 = sand.u32 (!%p1427_p3), 1, %s1334_s28  }
  0x35   : > { %s978_s11 = sshll.u32 (!%p1427_p3), %s1516_s25, 3  ;;  %s332_s15 = scalar_lea.sflag (!%p1427_p3), [#allocation4], %s1516_s25 }
  0x36   : > { %s335_s2 = scalar_lea.vmem (!%p1427_p3), [#allocation3], %s978_s11 }
  0x39   : > { %1313 = dma.done.wait (%p1478_p12), %s332_s15, 128  }
  0x3a   : > { %1315 = vsyncadd (%p1478_p12), %s332_s15, 4294967168 }
  0x3b   : > { %1317 = dma.done.wait (%p47_p1), [#allocation7], 1024  }
  0x3c   : > { %1319 = vsyncadd (%p47_p1), [#allocation7], 4294966272 }
  0x3d   : > { %1321 = dma.done.wait (%p47_p1), [#allocation10], 1024  }
  0x3e   : > { %1323 = vsyncadd (%p47_p1), [#allocation10], 4294966272  ;;  %v425_v0 = vld [vmem:[#allocation8 + $0x18] sm:$0xff]  ;;  %v424_v2 = vld [vmem:[#allocation8 + $0x10] sm:$0xff]  ;;  %vm398_vm0 = vcmask 261120   ;;  %vm474_vm1 = vcmask 64512  }
  0x3f   : > { %v393_v1 = vld [vmem:[#allocation6 + $0x18] sm:$0xff]  ;;  %438 = vmatpush.msra.mxu1 %v425_v0  ;;  %v392_v3 = vld [vmem:[#allocation6 + $0x10] sm:$0xff]  ;;  %v423_v4 = vld [vmem:[#allocation8 + $0x8] sm:$0xff]  ;;  %s1350_s13 = smov 120   ;;  %s1351_s23 = smov 104  }
  0x40   : > { %414 = vmatpush.msra.mxu0 %v393_v1  ;;  %v391_v5 = vld [vmem:[#allocation6 + $0x8] sm:$0xff]  ;;  %v422_v6 = vld [vmem:[#allocation8] sm:$0xff]  ;;  %v449_v7 = vld [vmem:[#allocation9 + $0x18] sm:$0xff]  ;;  %s1352_s18 = smov 112   ;;  %s1004_s16 = sshll.u32 %s1422_s12, 3 }
  0x41   : > { %439 = vmatpush.msra.mxu1 %v424_v2  ;;  %v448_v8 = vld [vmem:[#allocation9 + $0x10] sm:$0xff]  ;;  %v390_v9 = vld [vmem:[#allocation6] sm:$0xff]  ;;  %466 = vmatpush.msra.mxu2 %v449_v7  ;;  %v447_v11 = vld [vmem:[#allocation9 + $0x8] sm:$0xff]  ;;  %s855_s15 = scalar_lea.hbm %s1630_s8, %s1004_s16 }
  0x42   : > { %415 = vmatpush.msra.mxu0 %v392_v3  ;;  %v389_v10 = vld [vmem:[%s335_s2] sm:$0xff]  ;;  %v446_v12 = vld [vmem:[#allocation9] sm:$0xff]  ;;  %v1099_v13 = vld [vmem:[%s1627_s5] ss:$0 sm:$0xff]  ;;  %s388_s2 = scalar_lea.vmem [#allocation12], %s978_s11  ;;  %s859_s3 = sshll.u32 %s855_s15, 4  ;;  %s860_s3 = int_to_ptr.hbm [resolvable:$true] %s859_s3 }
  0x43   : > { %440 = vmatpush.msra.mxu1 %v423_v4  ;;  %467 = vmatpush.msra.mxu2 %v448_v8  ;;  %v1100_v17 = vld [vmem:[%s1628_s6] ss:$0 sm:$0xff]  ;;  %v535_v33 = vld [vmem:[#allocation11] sm:$0xff]  ;;  %s857_s1 = sshll.u32 %s388_s2, 4  ;;  %s1282_s19 = sshra.s32 %s860_s3, 4  ;;  %s858_s1 = int_to_ptr.vmem [resolvable:$true] %s857_s1  ;;  %s1283_s19 = int_to_ptr.hbm [resolvable:$true] %s1282_s19 }
  0x44   : > { %416 = vmatpush.msra.mxu0 %v391_v5  ;;  %v631_v32 = vld [vmem:[#allocation11 + $0x8] sm:$0xff]  ;;  %s1284_s12 = scalar_lea.hbm %s1283_s19, 8  ;;  %p1289_p12 = scmp.lt.s32.totalorder %s1283_s19, %s1630_s8 }
  0x45   : > { %441 = vmatpush.msra.mxu1 %v422_v6  ;;  %468 = vmatpush.msra.mxu2 %v447_v11  ;;  %v1101_v51 = vld [vmem:[%s1629_s7] ss:$0 sm:$0xff]  ;;  %p1285_p1 = scmp.ne.s32.totalorder %s1283_s19, %s1284_s12 }
  0x46   : > { %417 = vmatpush.msra.mxu0 %v390_v9  ;;  %985 = vmatmul.msk.f32.vlgmr.msra.gmra.mxu1 %vm398_vm0, %v389_v10 }
  0x47   : > { %984 = vmatmul.msk.f32.vlgmr.msra.gmra.mxu0 %vm398_vm0, %v389_v10  ;;  %469 = vmatpush.msra.mxu2 %v446_v12  ;;  %v723_v12 = vld [vmem:[#allocation11 + $0x10] sm:$0xff]  ;;  %p1286_p3 = pnand %p1285_p1, %p1485_p4 }
  0x48   : > { %986 = vmatmul.msk.f32.vlgmr.msra.gmra.mxu2 %vm398_vm0, %v389_v10  ;;  %554 = vmatpush.msrb.mxu0 %v535_v33 }
  0x49   : > { %p1287_p5 = pneg %p1286_p3 }
  0xc3   : > { %v443_v14 = vpop.f32.mrf.mxu1 }
  0xc4   : > { %v419_v15 = vpop.f32.mrf.mxu0  ;;  %567 = vrot.lane.b32.xlu0 %v443_v14, %s1350_s13  ;;  %987 = vmatpush.xpose.msk.msra.mxu3 %vm474_vm1, %v443_v14 }
  0xc5   : > { %v420_v16 = vadd.f32 %v1099_v13, %v419_v15  ;;  %v815_v13 = vld [vmem:[#allocation11 + $0x18] sm:$0xff] }
  0xc7   : > { %988 = vmatmul.msk.f32.vlgmr.msra.gmra.mxu3 %vm474_vm1, %v420_v16 }
  0xcb   : > { %v471_v18 = vpop.f32.mrf.mxu2 }
  0xcc   : > { %565 = vrot.lane.b32.xlu0 %v420_v16, %s1350_s13  ;;  %v1545_v19 = vadd.f32 %v1100_v17, %v471_v18 }
  0xce   : > { %530 = vmatpush.msrb.mxu3 %v1545_v19 }
  0xd0   : > { %650 = vmatpush.msra.mxu3 %v631_v32 }
  0xd4   : > { %605 = vrot.lane.b32.xlu0 %v1545_v19, %s1350_s13  ;;  %s845_s13 = scalar_lea.sflag [#allocation5], %s1516_s25 }
  0xdc   : > { %752 = vrot.lane.b32.xlu0 %v443_v14, %s1351_s23 }
  0xe4   : > { %750 = vrot.lane.b32.xlu0 %v420_v16, %s1351_s23 }
 0x136   : > { %v568_v20 = vpop.permute.xlu0 %567 }
 0x137   : > { %991 = vmatpush.xpose.msk.msrb.mxu1 %vm474_vm1, %v568_v20 }
 0x13e   : > { %v566_v21 = vpop.permute.xlu0 %565 }
 0x13f   : > { %992 = vmatmul.msk.f32.vlgmr.msrb.gmra.mxu1 %vm474_vm1, %v566_v21 }
 0x146   : > { %v606_v22 = vpop.permute.xlu0 %605 }
 0x147   : > { %626 = vmatpush.msrb.mxu2 %v606_v22 }
 0x149   : > { %742 = vmatpush.msra.mxu2 %v723_v12 }
 0x14a   : > { %v498_v23 = vpop.f32.mrf.mxu3 }
 0x14b   : > { %v501_v24 = vsel %vm474_vm1, %v498_v23, -inf }
 0x14c   : > { %502 = vmax.xlane.f32.xlu1 %v501_v24 }
 0x14e   : > { %v753_v42 = vpop.permute.xlu0 %752 }
 0x156   : > { %v751_v50 = vpop.permute.xlu0 %750 }
 0x1bc   : > { %v590_v25 = vpop.f32.mrf.mxu1 }
 0x1bd   : > { %v593_v26 = vsel %vm474_vm1, %v590_v25, -inf }
 0x1be   : > { %594 = vmax.xlane.f32.xlu1 %v593_v26 }
 0x1bf   : > { %v503_v27 = vpop.xlane.xlu1 %502 }
 0x1c0   : > { %v504_v28 = vsub.f32 %v498_v23, %v503_v27 }
 0x1c2   : > { %v505_v29 = vmul.f32 1.442695, %v504_v28 }
 0x1c4   : > { %1102 = vpow2.f32 %v505_v29 }
 0x1ca   : > { %v1103_v30 = vpop.eup %1102 }
 0x1cb   : > { %v507_v31 = vsel %vm474_vm1, %v1103_v30, 0.0 }
 0x1cc   : > { %508 = vadd.xlane.f32.xlu2 %v507_v31 }
 0x1d7   : > { %660 = vrot.lane.b32.xlu1 %v443_v14, %s1352_s18 }
 0x231   : > { %v595_v34 = vpop.xlane.xlu1 %594 }
 0x232   : > { %v596_v35 = vsub.f32 %v590_v25, %v595_v34 }
 0x234   : > { %v597_v36 = vmul.f32 1.442695, %v596_v35 }
 0x236   : > { %1104 = vpow2.f32 %v597_v36 }
 0x23c   : > { %v1105_v37 = vpop.eup %1104 }
 0x23d   : > { %v599_v38 = vsel %vm474_vm1, %v1105_v37, 0.0 }
 0x23e   : > { %600 = vadd.xlane.f32.xlu2 %v599_v38 }
 0x23f   : > { %v509_v39 = vpop.xlane.xlu2 %508 }
 0x240   : > { %1106 = vrcp.f32 %v509_v39 }
 0x246   : > { %v1107_v40 = vpop.eup %1106 }
 0x247   : > { %v511_v41 = vmul.f32 %v1107_v40, %v1103_v30 }
 0x249   : > { %989 = vmatmul.msk.f32.vlgmr.msrb.gmra.mxu3 %vm474_vm1, %v511_v41  ;;  %v661_v43 = vpop.permute.xlu1 %660 }
 0x24a   : > { %999 = vmatpush.xpose.msk.msrb.mxu3 %vm474_vm1, %v753_v42  ;;  %995 = vmatpush.xpose.msk.msra.mxu0 %vm474_vm1, %v661_v43 }
 0x256   : > { %658 = vrot.lane.b32.xlu2 %v420_v16, %s1352_s18 }
 0x2b1   : > { %v601_v44 = vpop.xlane.xlu2 %600 }
 0x2b2   : > { %1108 = vrcp.f32 %v601_v44 }
 0x2b8   : > { %v1109_v45 = vpop.eup %1108 }
 0x2b9   : > { %v603_v46 = vmul.f32 %v1109_v45, %v1105_v37  ;;  %v659_v48 = vpop.permute.xlu2 %658 }
 0x2bb   : > { %993 = vmatmul.msk.f32.vlgmr.msrb.gmra.mxu2 %vm474_vm1, %v603_v46 }
 0x2cc   : > { %v532_v47 = vpop.f32.mrf.mxu3 }
 0x2cd   : > { %990 = vmatmul.msk.f32.vlgmr.msrb.gmra.mxu0 %vm474_vm1, %v532_v47 }
 0x2d5   : > { %996 = vmatmul.msk.f32.vlgmr.msra.gmra.mxu0 %vm474_vm1, %v659_v48 }
 0x33e   : > { %v628_v49 = vpop.f32.mrf.mxu2 }
 0x33f   : > { %994 = vmatmul.msk.f32.vlgmr.msra.gmra.mxu3 %vm474_vm1, %v628_v49 }
 0x347   : > { %1000 = vmatmul.msk.f32.vlgmr.msrb.gmra.mxu3 %vm474_vm1, %v751_v50 }
 0x34a   : > { %v556_v52 = vpop.f32.mrf.mxu0 }
 0x34b   : > { %v563_v53 = vadd.f32 %v1101_v51, %v556_v52 }
 0x34d   : > { %564 = vst.msk [vmem:[#allocation2] sm:$0xff] %vm398_vm0, %v563_v53 }
 0x352   : > { %v683_v54 = vpop.f32.mrf.mxu0 }
 0x353   : > { %v686_v55 = vsel %vm474_vm1, %v683_v54, -inf }
 0x354   : > { %687 = vmax.xlane.f32.xlu0 %v686_v55  ;;  %v655_v57 = vld [vmem:[#allocation2] sm:$0xff] }
 0x3c2   : > { %v652_v56 = vpop.f32.mrf.mxu3 }
 0x3c3   : > { %v656_v58 = vadd.f32 %v655_v57, %v652_v56 }
 0x3c5   : > { %657 = vst.msk [vmem:[#allocation2] sm:$0xff] %vm398_vm0, %v656_v58 }
 0x3c7   : > { %v688_v59 = vpop.xlane.xlu0 %687 }
 0x3c8   : > { %v689_v60 = vsub.f32 %v683_v54, %v688_v59 }
 0x3ca   : > { %v690_v61 = vmul.f32 1.442695, %v689_v60  ;;  %v775_v62 = vpop.f32.mrf.mxu3 }
 0x3cb   : > { %v778_v63 = vsel %vm474_vm1, %v775_v62, -inf }
 0x3cc   : > { %1110 = vpow2.f32 %v690_v61  ;;  %779 = vmax.xlane.f32.xlu2 %v778_v63  ;;  %v747_v20 = vld [vmem:[#allocation2] sm:$0xff] }
 0x3d2   : > { %v1111_v0 = vpop.eup %1110 }
 0x3d3   : > { %v692_v1 = vsel %vm474_vm1, %v1111_v0, 0.0 }
 0x3d4   : > { %693 = vadd.xlane.f32.xlu1 %v692_v1 }
 0x3e4   : > { %697 = vrot.lane.b32.xlu2 %v1545_v19, %s1352_s18  ;;  %s1288_s18 = scalar_lea.hbm %s1630_s8, 16 }
 0x3e5   : > { %p1290_p7 = scmp.lt.s32.totalorder %s1288_s18, %s1284_s12 }
 0x3e7   : > { %p1291_p8 = por %p1290_p7, %p1289_p12 }
 0x3e9   : > { %p1292_p9 = pnand %p1291_p8, %p1287_p5 }
 0x3ed   : > { %789 = vrot.lane.b32.xlu1 %v1545_v19, %s1351_s23 }
 0x43f   : > { %v780_v2 = vpop.xlane.xlu2 %779 }
 0x440   : > { %v781_v3 = vsub.f32 %v775_v62, %v780_v2 }
 0x442   : > { %v782_v4 = vmul.f32 1.442695, %v781_v3 }
 0x444   : > { %1112 = vpow2.f32 %v782_v4 }
 0x447   : > { %v698_v5 = vpop.permute.xlu2 %697  ;;  %v694_v6 = vpop.xlane.xlu1 %693 }
 0x448   : > { %1114 = vrcp.f32 %v694_v6  ;;  %718 = vmatpush.msra.mxu1 %v698_v5 }
 0x44a   : > { %v1113_v7 = vpop.eup %1112  ;;  %834 = vmatpush.msrb.mxu1 %v815_v13 }
 0x44b   : > { %v784_v8 = vsel %vm474_vm1, %v1113_v7, 0.0 }
 0x44c   : > { %785 = vadd.xlane.f32.xlu0 %v784_v8 }
 0x44e   : > { %v1115_v9 = vpop.eup %1114 }
 0x44f   : > { %v696_v10 = vmul.f32 %v1115_v9, %v1111_v0 }
 0x451   : > { %997 = vmatmul.msk.f32.vlgmr.msra.gmra.mxu1 %vm474_vm1, %v696_v10 }
 0x45f   : > { %v790_v11 = vpop.permute.xlu1 %789 }
 0x460   : > { %810 = vmatpush.msrb.mxu0 %v790_v11 }
 0x4bf   : > { %v786_v14 = vpop.xlane.xlu0 %785 }
 0x4c0   : > { %1116 = vrcp.f32 %v786_v14 }
 0x4c6   : > { %v1117_v15 = vpop.eup %1116 }
 0x4c7   : > { %v788_v16 = vmul.f32 %v1117_v15, %v1113_v7 }
 0x4c9   : > { %1001 = vmatmul.msk.f32.vlgmr.msrb.gmra.mxu0 %vm474_vm1, %v788_v16 }
 0x4ce   : > { %v720_v17 = vpop.f32.mrf.mxu1 }
 0x4cf   : > { %998 = vmatmul.msk.f32.vlgmr.msra.gmra.mxu2 %vm474_vm1, %v720_v17 }
 0x546   : > { %v812_v18 = vpop.f32.mrf.mxu0 }
 0x547   : > { %1002 = vmatmul.msk.f32.vlgmr.msrb.gmra.mxu1 %vm474_vm1, %v812_v18 }
 0x552   : > { %v744_v19 = vpop.f32.mrf.mxu2 }
 0x553   : > { %v748_v21 = vadd.f32 %v747_v20, %v744_v19 }
 0x555   : > { %749 = vst.msk [vmem:[#allocation2] sm:$0xff] %vm398_vm0, %v748_v21 }
 0x55c   : > { %v839_v23 = vld [vmem:[#allocation2] sm:$0xff] }
 0x5c4   : > { %v836_v22 = vpop.f32.mrf.mxu1 }
 0x5c5   : > { %v840_v24 = vadd.f32 %v839_v23, %v836_v22 }
 0x5c7   : > { %841 = vst.msk [vmem:[#allocation2] sm:$0xff] %vm398_vm0, %v840_v24 }
 0x5ce   : > { %v842_v25 = vld [vmem:[#allocation2] sm:$0xff] }
 0x5cf   : > { %843 = vst.msk [vmem:[%s388_s2] sm:$0xff] %vm398_vm0, %v842_v25 }
 0x5d0   : > { %1295 = shalt.err (!%p1292_p9)
}
 0x5d1   : > { %1025 = dma.vmem_to_hbm [thread:$0]  (%p1485_p4), %s858_s1, 128, %s860_s3, %s845_s13  }
 0x5d2 PF: > { %s871_s25 = sand.u32 1, %s1330_s27   ;;  %p1644_p10 = scmp.ge.s32.totalorder %s1342_s30, 2 }
 0x5d3   : > { %s872_s14 = scalar_lea.sflag [#allocation5], %s871_s25 }
 0x5d4   : > { %p1045_p13 = pnand %p1644_p10, %p1489_p6 }
 0x5d6   : > { %p1046_p11 = pneg %p1045_p13 }
 0x5d8   : > { %1325 = dma.done.wait (%p1046_p11), %s872_s14, 128  }
 0x5d9   : > { %1327 = vsyncadd (%p1046_p11), %s872_s14, 4294967168  ;;  %p23_p0 = scmp.ge.s32.totalorder %s1459_s20, 4   ;;  %s1645_s27 = smov %s1334_s28 }
 0x5da   : > { %s1646_s28 = smov %s1338_s29  ;;  %s1647_s29 = smov %s1470_s22 }
 0x5db   : > { %s1648_s30 = smov %s1459_s20  ;;  %25 = sbr.rel (!%p23_p0) target bundleno = 11 (0xb), region = 113 }
 0x5e0   :  { %878 = vsyncpa [#allocation4], 1 }
 0x5e1   :  { %880 = vsyncpa [#allocation4 + $0x1], 1 }
 0x5e2   :  { %881 = vsyncpa [#allocation7], 1 }
 0x5e3   :  { %882 = vsyncpa [#allocation10], 1 }
 0x5e4   :  { %883 = vsyncpa [#allocation5], 1 }
 0x5e5   :  { %885 = vsyncpa [#allocation5 + $0x1], 1 }

</bundles_post_ra>
